<compile_context>
chip_gen: v7x
topology: tpu7x:2x2x1
jax: 0.10.0
libtpu: 0.0.40
codegen_flags: <defaults>
</compile_context>

<pallas_src>
import jax
import jax.numpy as jnp
from jax.experimental import pallas as pl
from jax.experimental.pallas import tpu as pltpu

_LANES = 128
_SUBLANES = 8
# Budget for the double-buffered input+output blocks of one grid step.
_VMEM_BUDGET_BYTES = 10 * 1024 * 1024


def _round_up(x: int, m: int) -> int:
    return ((x + m - 1) // m) * m


def _cdiv(a: int, b: int) -> int:
    return -(-a // b)


def _default_grid_tiles() -> int:
    """1 grid step on single-TensorCore chips (v5e/v6e); 2 on v7x so the
    'parallel' grid axis puts one tile on each TensorCore."""
    try:
        kind = jax.devices()[0].device_kind.lower()
        if ("v7" in kind) or ("7x" in kind):
            return 2
    except Exception:
        pass
    return 1


def _make_fix_length_kernel(tile_cols: int, batch: int, scale: float):
    """One grid step = one (batch, tile_cols) column slab of the output.

    meta_ref (SMEM, scalar prefetch): [last_needed_input_block, min_valid,
    max_valid].  lens_ref (VMEM, (B,1) int32): per-clip valid length
    (already clamped to min(len, n_in, L)).
    """

    def kernel(meta_ref, lens_ref, x_ref, o_ref):
        t = pl.program_id(0)
        start = t * tile_cols
        end = start + tile_cols
        min_valid = meta_ref[1]
        max_valid = meta_ref[2]

        def loaded():
            v = x_ref[...].astype(jnp.float32)
            if scale != 1.0:
                v = v * jnp.float32(scale)
            return v

        # Tile fully inside every clip's valid region: straight copy + cast.
        @pl.when(end <= min_valid)
        def _():
            o_ref[...] = loaded()

        # Tile fully inside every clip's zero-pad tail: write zeros once
        # (no input bytes are consumed on this path).
        @pl.when(start >= max_valid)
        def _():
            o_ref[...] = jnp.zeros_like(o_ref)

        # Boundary tile(s): per-clip masked select at the valid/pad edge.
        @pl.when(jnp.logical_and(end > min_valid, start < max_valid))
        def _():
            col = start + jax.lax.broadcasted_iota(
                jnp.int32, (batch, tile_cols), 1)
            o_ref[...] = jnp.where(col < lens_ref[...], loaded(),
                                   jnp.float32(0.0))

    return kernel


class SafeLoader:
    """JAX/Pallas port of SafeLoader's on-device forward path.

    Takes pre-decoded waveforms (single 1-D clip or a (B, n_in) bucket) and
    returns the fix_length'ed float32 tensor of shape (1, L) / (B, L),
    matching torch.tensor(np.expand_dims(librosa.util.fix_length(w, L), 0)).
    """
    # TODO(synk): librosa.load / librosa.resample (host file decode +
    # polyphase resampling) have no Pallas equivalent; waveforms arrive
    # pre-decoded (float, bf16 or int16 PCM).

    def __init__(self, sample_rate: int = 22050, duration: int = 10,
                 mono: bool = True, grid_tiles=None, tile_cols=None):
        self.sample_rate = sample_rate
        self.duration = duration
        self.mono = mono  # API parity; multi-channel not handled
        self.length = self.duration * self.sample_rate
        self.grid_tiles = grid_tiles      # None -> auto from device kind
        self.tile_cols_override = tile_cols

    def __call__(self, waveform: jnp.ndarray, lengths=None) -> jnp.ndarray:
        assert waveform.ndim in (1, 2), "expects (n,) or (B, n) waveforms"
        if waveform.ndim == 1:
            waveform = waveform[None, :]          # free reshape, no copy
        B, n_in = int(waveform.shape[0]), int(waveform.shape[1])
        assert n_in >= 1
        L = int(self.length)

        # librosa.load hands back float PCM normalized to [-1, 1); if the
        # host delivers raw integer PCM, apply the matching normalization
        # inside the kernel (keeps the HBM read narrow).
        if waveform.dtype == jnp.int16:
            scale = 1.0 / 32768.0
        elif jnp.issubdtype(waveform.dtype, jnp.integer):
            scale = 1.0 / float(jnp.iinfo(waveform.dtype).max + 1)
        else:
            scale = 1.0

        # Per-clip valid lengths (runtime scalars -> truncation & padding are
        # masks, never wrapper-side slices/pads; no recompile per clip len).
        if lengths is None:
            lengths = jnp.full((B,), n_in, dtype=jnp.int32)
        else:
            lengths = jnp.asarray(lengths, dtype=jnp.int32)
        n_valid = jnp.minimum(jnp.minimum(lengths, n_in), L)       # (B,)

        # Tile geometry: lane-dense (B, tile_cols) column slabs.
        tiles = self.grid_tiles or _default_grid_tiles()
        cols_needed = _round_up(L, _LANES)
        tile_cols = self.tile_cols_override
        if tile_cols is None:
            tile_cols = _cdiv(cols_needed, max(1, tiles))
        tile_cols = max(_LANES, _round_up(int(tile_cols), _LANES))
        # Cap so double-buffered in+out blocks stay well under scoped VMEM
        # (sublane dim of a block rounds B up to 8).
        row_bytes = _round_up(B, _SUBLANES) * (waveform.dtype.itemsize + 4) * 2
        max_tile_cols = max(
            _LANES, (_VMEM_BUDGET_BYTES // row_bytes) // _LANES * _LANES)
        tile_cols = min(tile_cols, max_tile_cols, cols_needed)
        num_tiles = _cdiv(L, tile_cols)

        # Scalar-prefetch metadata: last input block any tile actually needs
        # (tail zero-tiles clamp here and skip fresh DMAs), plus min/max
        # valid length for the per-tile branch choice.
        min_valid = jnp.min(n_valid).astype(jnp.int32)
        max_valid = jnp.max(n_valid).astype(jnp.int32)
        last_blk = jnp.maximum(
            (max_valid + tile_cols - 1) // tile_cols - 1, 0).astype(jnp.int32)
        meta = jnp.stack([last_blk, min_valid, max_valid]).astype(jnp.int32)
        lens2d = n_valid[:, None].astype(jnp.int32)                 # (B, 1)

        kernel = _make_fix_length_kernel(tile_cols, B, scale)

        out = pl.pallas_call(
            kernel,
            out_shape=jax.ShapeDtypeStruct((B, L), jnp.float32),
            grid_spec=pltpu.PrefetchScalarGridSpec(
                num_scalar_prefetch=1,
                grid=(num_tiles,),
                in_specs=[
                    pl.BlockSpec((B, 1), lambda t, meta: (0, 0)),
                    pl.BlockSpec(
                        (B, tile_cols),
                        # Clamp: tiles past the last needed input block map to
                        # the same block index -> the pipeline skips re-fetch.
                        lambda t, meta: (0, jnp.minimum(t, meta[0]))),
                ],
                out_specs=pl.BlockSpec((B, tile_cols),
                                       lambda t, meta: (0, t)),
            ),
            compiler_params=pltpu.CompilerParams(
                dimension_semantics=("parallel",)),
        )(meta, lens2d, waveform)
        return out          # (B, L) float32; B=1 -> module's (1, L)


def _reference(waveform: jnp.ndarray, length: int) -> jnp.ndarray:
    """Pure-JAX reference: fix_length + expand_dims + float32 cast."""
    n = waveform.shape[0]
    if n >= length:
        y = waveform[:length]
    else:
        y = jnp.concatenate(
            [waveform, jnp.zeros((length - n,), waveform.dtype)], axis=0)
    return y.astype(jnp.float32)[None, :]


if __name__ == "__main__":
    key = jax.random.PRNGKey(0)
    k1, k2, k3, k4 = jax.random.split(key, 4)

    # Loader A: sample_rate=256, duration=2 -> L=512.  Single-clip paths.
    loader_a = SafeLoader(sample_rate=256, duration=2, mono=True)
    w_short = jax.random.normal(k1, (400,), dtype=jnp.float32)    # zero-pad
    w_long = jax.random.normal(k2, (700,), dtype=jnp.float32)     # truncate
    w_bf16 = jax.random.normal(k3, (300,),
                               dtype=jnp.float32).astype(jnp.bfloat16)
    out_pad = loader_a(w_short)
    out_trunc = loader_a(w_long)
    out_bf16 = loader_a(w_bf16)     # narrow-dtype HBM read, cast in kernel

    # Loader B: batched bucket, L=2048, forced 512-wide tiles so the 4-step
    # grid exercises the copy / boundary / zero tile branches.
    loader_b = SafeLoader(sample_rate=256, duration=8, mono=True,
                          tile_cols=512)
    wav_b = jax.random.normal(k4, (4, 3000), dtype=jnp.float32)
    lens_b = jnp.array([1500, 1000, 700, 600], dtype=jnp.int32)
    out_batch = loader_b(wav_b, lengths=lens_b)

    jax.block_until_ready((out_pad, out_trunc, out_bf16, out_batch))

    ref_pad = _reference(w_short, loader_a.length)
    ref_trunc = _reference(w_long, loader_a.length)
    ref_bf16 = _reference(w_bf16, loader_a.length)
    ref_batch = jnp.concatenate(
        [_reference(wav_b[b, :int(lens_b[b])], loader_b.length)
         for b in range(wav_b.shape[0])], axis=0)

    assert out_pad.shape == (1, loader_a.length) and out_pad.dtype == jnp.float32
    assert out_trunc.shape == (1, loader_a.length) and out_trunc.dtype == jnp.float32
    assert out_bf16.shape == (1, loader_a.length) and out_bf16.dtype == jnp.float32
    assert out_batch.shape == (4, loader_b.length) and out_batch.dtype == jnp.float32
    assert jnp.allclose(out_pad, ref_pad)
    assert jnp.allclose(out_trunc, ref_trunc)
    assert jnp.allclose(out_bf16, ref_bf16)
    assert jnp.allclose(out_batch, ref_batch)

    print("KERNEL_OK")
</pallas_src>

<mosaic_0001>
module attributes {stable_mosaic.version = 11 : i64} {
  func.func @kernel(%arg0: i32, %arg1: memref<3xi32, #tpu.memory_space<smem>>, %arg2: memref<1x1xi32, #tpu.memory_space<vmem>>, %arg3: memref<1x512xf32, #tpu.memory_space<vmem>>, %arg4: memref<1x512xf32, #tpu.memory_space<vmem>>) attributes {dimension_semantics = [#tpu.dimension_semantics<parallel>], iteration_bounds = array<i64: 1>, scalar_prefetch = 1 : i64, scratch_operands = 0 : i64, tpu.core_type = #tpu.core_type<tc>, window_params = [{pipeline_mode = #tpu.pipeline_mode<synchronous>, transform_indices = @transform_0, window_bounds = array<i64: 1, 1>}, {transform_indices = @transform_1, window_bounds = array<i64: 1, 512>}, {transform_indices = @transform_2, window_bounds = array<i64: 1, 512>}]} {
    %c512_i32 = arith.constant 512 : i32
    %0 = arith.muli %arg0, %c512_i32 : i32
    %c512_i32_0 = arith.constant 512 : i32
    %1 = arith.addi %0, %c512_i32_0 : i32
    %c1 = arith.constant 1 : index
    %2 = memref.load %arg1[%c1] : memref<3xi32, #tpu.memory_space<smem>>
    %c2 = arith.constant 2 : index
    %3 = memref.load %arg1[%c2] : memref<3xi32, #tpu.memory_space<smem>>
    %4 = arith.cmpi sle, %1, %2 : i32
    %5 = arith.extui %4 : i1 to i32
    %c0_i32 = arith.constant 0 : i32
    %6 = arith.cmpi ne, %5, %c0_i32 : i32
    scf.if %6 {
      %c0 = arith.constant 0 : index
      %c0_3 = arith.constant 0 : index
      %15 = vector.load %arg3[%c0, %c0_3] : memref<1x512xf32, #tpu.memory_space<vmem>>, vector<1x512xf32>
      %c0_4 = arith.constant 0 : index
      %c0_5 = arith.constant 0 : index
      %16 = vector.load %arg4[%c0_4, %c0_5] : memref<1x512xf32, #tpu.memory_space<vmem>>, vector<1x512xf32>
      tpu.vector_store %arg4[%c0_4, %c0_5], %15 {strides = array<i32>} : memref<1x512xf32, #tpu.memory_space<vmem>>, vector<1x512xf32>,
    } else {
    }
    %7 = arith.cmpi sge, %0, %3 : i32
    %8 = arith.extui %7 : i1 to i32
    %c0_i32_1 = arith.constant 0 : i32
    %9 = arith.cmpi ne, %8, %c0_i32_1 : i32
    scf.if %9 {
      %cst = arith.constant 0.000000e+00 : f32
      %15 = vector.broadcast %cst : f32 to vector<1x512xf32>
      %c0 = arith.constant 0 : index
      %c0_3 = arith.constant 0 : index
      %16 = vector.load %arg4[%c0, %c0_3] : memref<1x512xf32, #tpu.memory_space<vmem>>, vector<1x512xf32>
      tpu.vector_store %arg4[%c0, %c0_3], %15 {strides = array<i32>} : memref<1x512xf32, #tpu.memory_space<vmem>>, vector<1x512xf32>,
    } else {
    }
    %10 = arith.cmpi sgt, %1, %2 : i32
    %11 = arith.cmpi slt, %0, %3 : i32
    %12 = arith.andi %10, %11 : i1
    %13 = arith.extui %12 : i1 to i32
    %c0_i32_2 = arith.constant 0 : i32
    %14 = arith.cmpi ne, %13, %c0_i32_2 : i32
    scf.if %14 {
      %15 = tpu.iota {dimensions = array<i32: 1>} : vector<1x512xi32>
      %16 = vector.broadcast %0 : i32 to vector<1x512xi32>
      %17 = arith.addi %16, %15 : vector<1x512xi32>
      %c0 = arith.constant 0 : index
      %c0_3 = arith.constant 0 : index
      %18 = vector.load %arg2[%c0, %c0_3] : memref<1x1xi32, #tpu.memory_space<vmem>>, vector<1x1xi32>
      %19 = vector.broadcast %18 : vector<1x1xi32> to vector<1x512xi32>
      %20 = arith.cmpi slt, %17, %19 : vector<1x512xi32>
      %c0_4 = arith.constant 0 : index
      %c0_5 = arith.constant 0 : index
      %21 = vector.load %arg3[%c0_4, %c0_5] : memref<1x512xf32, #tpu.memory_space<vmem>>, vector<1x512xf32>
      %cst = arith.constant 0.000000e+00 : f32
      %22 = vector.broadcast %cst : f32 to vector<1x512xf32>
      %23 = arith.select %20, %21, %22 : vector<1x512xi1>, vector<1x512xf32>
      %c0_6 = arith.constant 0 : index
      %c0_7 = arith.constant 0 : index
      %24 = vector.load %arg4[%c0_6, %c0_7] : memref<1x512xf32, #tpu.memory_space<vmem>>, vector<1x512xf32>
      tpu.vector_store %arg4[%c0_6, %c0_7], %23 {strides = array<i32>} : memref<1x512xf32, #tpu.memory_space<vmem>>, vector<1x512xf32>,
    } else {
    }
    return
  }
  func.func @transform_0(%arg0: i32, %arg1: memref<3xi32, #tpu.memory_space<smem>>) -> (i32, i32) {
    %c0_i32 = arith.constant 0 : i32
    %c0_i32_0 = arith.constant 0 : i32
    %c0_i32_1 = arith.constant 0 : i32
    return %c0_i32, %c0_i32_0 : i32, i32
  }
  func.func @transform_1(%arg0: i32, %arg1: memref<3xi32, #tpu.memory_space<smem>>) -> (i32, i32) {
    %c0 = arith.constant 0 : index
    %0 = memref.load %arg1[%c0] : memref<3xi32, #tpu.memory_space<smem>>
    %1 = arith.minsi %arg0, %0 : i32
    %c0_i32 = arith.constant 0 : i32
    %c0_i32_0 = arith.constant 0 : i32
    return %c0_i32, %1 : i32, i32
  }
  func.func @transform_2(%arg0: i32, %arg1: memref<3xi32, #tpu.memory_space<smem>>) -> (i32, i32) {
    %c0_i32 = arith.constant 0 : i32
    %c0_i32_0 = arith.constant 0 : i32
    return %c0_i32, %arg0 : i32, i32
  }
}

</mosaic_0001>

<bundles_post_ra>
// kernel: tpu_custom_call.1
= control target key start
LH: loop header
LB: loop body
LE: loop exit
PB: predicated region body
PF: predicated region fallthrough
CT: control target
= control target key end

     0   :  { %s280_s0 = inlined_call_operand.vmem [shape: s32[3], index: 0, kind: input, shape index: {}]   ;;  %s281_s2 = inlined_call_operand.vmem [shape: f32[1,400], index: 2, kind: input, shape index: {}]   ;;  %s282_s3 = inlined_call_operand.hbm [shape: f32[1,512], index: 3, kind: output, shape index: {}]   ;;  %s283_s1 = inlined_call_operand.<no memory space> [shape: s32[1,1], index: 1, kind: input, shape index: {}]  }
   0x1   :  { %s8_s14 = sshll.u32 %s280_s0, 4  ;;  %v12_v0 = vstv %s283_s1  ;;  %s9_s14 = int_to_ptr.vmem [resolvable:$true] %s8_s14 }
   0x2   :  { %13 = vst [vmem:[#allocation4] sm:$0x1] %v12_v0  ;;  %s194_s17 = scalar_lea.vmem %s9_s14, 16  ;;  %p199_p1 = scmp.lt.s32.totalorder %s9_s14, %s9_s14 }
   0x3   :  { %p195_p0 = scmp.ne.s32.totalorder %s9_s14, %s194_s17  ;;  %p200_p2 = scmp.lt.s32.totalorder %s194_s17, %s194_s17 }
   0x5   :  { %p201_p3 = por %p200_p2, %p199_p1 }
   0x7   :  { %p202_p4 = pnand %p201_p3, %p195_p0 }
   0x9   :  { %205 = shalt.err (!%p202_p4)  }
   0xa   :  { %s232_s18 = smov [#allocation3]  }
   0xb   :  { %11 = dma.vmem_to_smem %s9_s14, 16, %s232_s18, [#allocation2] }
   0xc   :  { %228 = dma.done.wait [#allocation2], 16 }
   0xd   :  { %229 = vsyncadd [#allocation2], 4294967280 }
   0xe   :  { %15 = sfence }
   0xf   :  { %16 = vsyncpa [#allocation6], 0  ;;  %s39_s0 = sld [smem:[#allocation3]]  ;;  %s180_s19 = sld [smem:[#allocation3 + $0x1]] }
  0x10   :  { %s181_s20 = sld [smem:[#allocation3 + $0x2]] }
  0x15   :  { %p178_p5 = scmp.gt.s32.totalorder %s39_s0, 0  ;;  %p183_p7 = scmp.lt.s32.totalorder %s180_s19, 512 }
  0x16   :  { %v59_v2 = vlaneseq (!%p183_p7) }
  0x17   :  { %s285_s0 = smov (%p178_p5, %s39_s0), 0  ;;  %57 = sbr.rel (%p183_p7) target bundleno = 31 (0x1f), region = 13 }
  0x18   :  { %s179_s1 = sshll.u32 %s285_s0, 2  ;;  %vm61_vm0 = vcmp.lt.s32.totalorder (!%p183_p7), %v59_v2, 512 }
  0x19   :  { %p43_p6 = scmp.lt.s32.totalorder %s179_s1, 3 }
  0x1b   :  { %s287_s1 = smov (!%p43_p6, %s179_s1), 3 }
  0x1c   :  { %s45_s23 = scalar_lea.vmem %s281_s2, %s287_s1 }
  0x1d   :  { %v58_v1 = vld [vmem:[%s45_s23] sm:$0xf] (!%p183_p7) }
  0x1e   :  { %63 = vst.msk [vmem:[#allocation5] sm:$0xf] %vm61_vm0, %v58_v1 }
  0x1f PF:  { %p185_p8 = scmp.gt.s32.totalorder %s181_s20, 0 }
  0x20   :  { %v68_v3 = vlaneseq (!%p185_p8)  ;;  %v233_v4 = vmov (!%p185_p8), 0.0  }
  0x21   :  { %67 = sbr.rel (%p185_p8) target bundleno = 40 (0x28), region = 17 }
  0x22   :  { %vm70_vm1 = vcmp.lt.s32.totalorder (!%p185_p8), %v68_v3, 512 }
  0x23   :  { %72 = vst.msk [vmem:[#allocation5] sm:$0xf] (!%p185_p8), %vm70_vm1, %v233_v4 }
  0x28 PF:  { %p75_p9 = pnand %p185_p8, %p183_p7 }
  0x29   :  { %v89_v5 = vld [vmem:[#allocation4] sm:$0x1] (!%p75_p9)  ;;  %v234_v6 = vmov (!%p75_p9), 0   ;;  %v79_v7 = vlaneseq (!%p75_p9)  ;;  %v235_v9 = vmov (!%p75_p9), 1966171168  }
  0x2a   :  { %78 = sbr.rel (%p75_p9) target bundleno = 184 (0xb8), region = 21  ;;  %193 = vset.pattern.permute.xlu0 (!%p75_p9), %v234_v6  ;;  %v134_v10 = vunpack.c.l.s4 (!%p75_p9), %v235_v9  ;;  %v101_v16 = vld [vmem:[%s45_s23] sm:$0xf] (!%p75_p9) }
  0x2b   :  { %91 = vperm.xlu0 (!%p75_p9), %193, %v89_v5   ;;  %v94_v8 = vshrl.u32 (!%p75_p9), %v79_v7, 7  ;;  %v80_v11 = vand.u32 (!%p75_p9), 127, %v79_v7  ;;  %vm158_vm6 = vcmp.lt.s32.totalorder (!%p75_p9), %v79_v7, 512 }
  0x2c   :  { %v135_v17 = vunpack.c.0.s8 (!%p75_p9), %v134_v10 }
  0x2d   :  { %v95_v12 = vsub.s32 (!%p75_p9), 0, %v94_v8  ;;  %v109_v13 = vsub.s32 (!%p75_p9), 1, %v94_v8  ;;  %v113_v14 = vsub.s32 (!%p75_p9), 2, %v94_v8  ;;  %v117_v15 = vsub.s32 (!%p75_p9), 3, %v94_v8 }
  0x2e   :  { %v81_v18 = vadd.s32 (!%p75_p9), 128, %v80_v11  ;;  %v82_v19 = vadd.s32 (!%p75_p9), 256, %v80_v11  ;;  %v83_v20 = vadd.s32 (!%p75_p9), 384, %v80_v11  ;;  %v138_v27 = vsub.s32 (!%p75_p9), %v135_v17, %v94_v8 }
  0x2f   :  { %v106_v22 = vrot.slane (!%p75_p9), %v101_v16, %v95_v12  ;;  %v110_v23 = vrot.slane (!%p75_p9), %v101_v16, %v109_v13  ;;  %v114_v24 = vrot.slane (!%p75_p9), %v101_v16, %v113_v14  ;;  %v118_v25 = vrot.slane (!%p75_p9), %v101_v16, %v117_v15 }
  0xaa   :  { %v92_v21 = vpop.permute.xlu0 %91 }
  0xab   :  { %v96_v26 = vrot.slane %v92_v21, %v95_v12 }
  0xad   :  { %vm97_vm2 = vcmp.lt.s32.totalorder %v80_v11, %v96_v26  ;;  %vm98_vm3 = vcmp.lt.s32.totalorder %v81_v18, %v96_v26  ;;  %vm99_vm4 = vcmp.lt.s32.totalorder %v82_v19, %v96_v26  ;;  %vm100_vm5 = vcmp.lt.s32.totalorder %v83_v20, %v96_v26 }
  0xae   :  { %v123_v28 = vsel %vm97_vm2, %v106_v22, 0.0  ;;  %v124_v29 = vsel %vm98_vm3, %v110_v23, 0.0  ;;  %v125_v30 = vsel %vm99_vm4, %v114_v24, 0.0  ;;  %v126_v31 = vsel %vm100_vm5, %v118_v25, 0.0 }
  0xaf   :  { %v131_v32 = vcombine.low %v123_v28, %v124_v29  ;;  %v132_v33 = vcombine.low %v125_v30, %v126_v31 }
  0xb1   :  { %v139_v34 = vrot.slane %v131_v32, %v138_v27  ;;  %v146_v35 = vrot.slane %v132_v33, %v138_v27 }
  0xb3   :  { %v147_v36 = vcombine.low %v139_v34, %v146_v35 }
  0xb5   :  { %v154_v37 = vrot.slane %v147_v36, %v138_v27 }
  0xb7   :  { %160 = vst.msk [vmem:[#allocation5] sm:$0xf] %vm158_vm6, %v154_v37 }
  0xb8 PF:  { %s236_s2 = smov [#allocation5]  }
  0xb9   :  { %s167_s24 = sshll.u32 %s236_s2, 4  ;;  %s168_s24 = int_to_ptr.vmem [resolvable:$true] %s167_s24 }
  0xba   :  { %s206_s25 = scalar_lea.vmem %s168_s24, 64  ;;  %p211_p11 = scmp.lt.s32.totalorder %s168_s24, %s168_s24 }
  0xbb   :  { %p207_p10 = scmp.ne.s32.totalorder %s168_s24, %s206_s25  ;;  %p212_p12 = scmp.lt.s32.totalorder %s206_s25, %s206_s25 }
  0xbd   :  { %p213_p13 = por %p212_p12, %p211_p11 }
  0xbf   :  { %p214_p0 = pnand %p213_p13, %p207_p10 }
  0xc1   :  { %217 = shalt.err (!%p214_p0)
}
  0xc2   :  { %s218_s28 = scalar_lea.hbm %s282_s3, 64 }
  0xc3   :  { %p219_p1 = scmp.ne.s32.totalorder %s282_s3, %s218_s28  ;;  %p222_p2 = scmp.lt.u32.totalorder %s218_s28, %s282_s3 }
  0xc5   :  { %p224_p3 = pnand %p222_p2, %p219_p1 }
  0xc7   :  { %227 = shalt.err (!%p224_p3)
}
  0xc8   :  { %170 = dma.vmem_to_hbm [thread:$0]  %s168_s24, 64, %s282_s3, [#allocation6]  }
  0xc9   :  { %230 = dma.done.wait [#allocation6], 64  }
  0xca   :  { %231 = vsyncadd [#allocation6], 4294967232 }
  0xcb   :  { %174 = vsyncpa [#allocation6], 1 }

</bundles_post_ra>
